<compile_context>
chip_gen: v6e
topology: v6e:2x2x1
jax: 0.10.0
libtpu: 0.0.40
codegen_flags: <defaults>
</compile_context>

<pallas_src>
import functools

import jax
import jax.numpy as jnp
from jax.experimental import pallas as pl
from jax.experimental.pallas import tpu as pltpu

EPS = 1e-05
LANE = 128
SUBLANE = 8


def _dice_kernel(*refs, is_soft, with_complement, tr, n_valid, needs_mask):
    if with_complement:
        yp1_ref, yp2_ref, yt_ref, out_ref, num_acc, den_acc = refs
    else:
        yp1_ref, yt_ref, out_ref, num_acc, den_acc = refs
        yp2_ref = None

    c = pl.program_id(1)
    nc = pl.num_programs(1)

    @pl.when(c == 0)
    def _():
        num_acc[...] = jnp.zeros_like(num_acc)
        den_acc[...] = jnp.zeros_like(den_acc)

    def fold(x):
        # (tr, 128) -> accumulator shape, using plain VPU adds when tr % 8 == 0.
        if tr % SUBLANE == 0:
            return jnp.sum(x.reshape(tr // SUBLANE, SUBLANE, LANE), axis=0)
        # Small/odd single-chunk fallback: sublane reduce once per batch.
        return jnp.sum(x, axis=0, keepdims=True)

    def accumulate(masked):
        yp1 = yp1_ref[...].astype(jnp.float32).reshape(tr, LANE)
        yt = yt_ref[...].astype(jnp.float32).reshape(tr, LANE)
        if with_complement:
            yp2 = yp2_ref[...].astype(jnp.float32).reshape(tr, LANE)

        if masked:
            # Global element index of every entry in this block; anything past
            # the true per-batch element count (block overhang garbage and/or
            # lane padding) is zeroed BEFORE any arithmetic (select-first, so
            # NaN garbage cannot propagate).
            rows = jax.lax.broadcasted_iota(jnp.int32, (tr, LANE), 0)
            lanes = jax.lax.broadcasted_iota(jnp.int32, (tr, LANE), 1)
            elem = (c * tr + rows) * LANE + lanes
            valid = elem < n_valid
            zero = jnp.zeros_like(yp1)
            yp1 = jnp.where(valid, yp1, zero)
            yt = jnp.where(valid, yt, zero)
            if with_complement:
                yp2 = jnp.where(valid, yp2, zero)

        num_t = yt * yp1
        if is_soft:
            den_t = yt * yt + yp1 * yp1
        else:
            den_t = yt + yp1

        if with_complement:
            # Complement target channels (1 - y_true), folded on the fly.
            ytc = 1.0 - yt
            if masked:
                ytc = jnp.where(valid, ytc, jnp.zeros_like(ytc))
            num_t = num_t + ytc * yp2
            if is_soft:
                den_t = den_t + ytc * ytc + yp2 * yp2
            else:
                den_t = den_t + ytc + yp2

        num_acc[...] += fold(num_t)
        den_acc[...] += fold(den_t)

    if needs_mask:
        # Mask work only on the trailing chunk; full chunks stay mask-free.
        @pl.when(c < nc - 1)
        def _():
            accumulate(masked=False)

        @pl.when(c == nc - 1)
        def _():
            accumulate(masked=True)
    else:
        accumulate(masked=False)

    @pl.when(c == nc - 1)
    def _():
        # One cross-lane/sublane reduce per batch, in the epilogue only.
        num = jnp.sum(num_acc[...])
        den = jnp.sum(den_acc[...])
        loss_b = 1.0 - (2.0 * num + EPS) / (den + EPS)
        out_ref[...] = jnp.broadcast_to(loss_b, out_ref.shape)


def _row_align(dtype):
    # Rows per vreg sublane-pack: f32 -> 8, bf16 -> 16, int8/fp8 -> 32.
    return max(SUBLANE, 32 // jnp.dtype(dtype).itemsize)


def dice_loss(y_pred, y_true, *, is_soft=False, max_tile_rows=8192):
    b = y_pred.shape[0]
    with_complement = y_pred.shape[1] != y_true.shape[1]

    if with_complement:
        # torch: y_true = cat((y_true, 1 - y_true), dim=1); we never
        # materialize the concat — the complement term is computed in-kernel.
        assert (
            y_pred.shape[0] == y_true.shape[0]
            and y_pred.shape[1] == 2 * y_true.shape[1]
            and y_pred.shape[2:] == y_true.shape[2:]
        ), "predict & target shape do not match"
        yt = y_true.reshape(b, -1)
        n = yt.shape[1]
        yp = y_pred.reshape(b, 2, n)  # free reshape: [true-channels, complement]
    else:
        assert y_true.shape == y_pred.shape, "predict & target shape do not match"
        yp = y_pred.reshape(b, -1)
        yt = y_true.reshape(b, -1)
        n = yp.shape[1]

    # View the feature dim as a dense (rows, 128) slab.  When N % 128 == 0
    # (typical conv shapes) this is a free reshape — no copy, no pad.
    n_lane = pl.cdiv(n, LANE) * LANE
    if n_lane != n:
        # TODO(synk): pad-free ragged path (keep (B, N) layout, mask lanes
        # in-kernel); only hit when N is not 128-aligned.  The zero pad is
        # sum-neutral for the non-complement terms and the in-kernel element
        # mask (elem < n) excludes it from the complement terms.
        pad = n_lane - n
        if with_complement:
            yp = jnp.pad(yp, ((0, 0), (0, 0), (0, pad)))
        else:
            yp = jnp.pad(yp, ((0, 0), (0, pad)))
        yt = jnp.pad(yt, ((0, 0), (0, pad)))

    r = n_lane // LANE
    if with_complement:
        yp = yp.reshape(b, 2, r, LANE)
    else:
        yp = yp.reshape(b, r, LANE)
    yt = yt.reshape(b, r, LANE)

    # Rows per tile: capped so (inputs x 2 pipeline buffers) stays well inside
    # the 32 MiB scoped VMEM we request (v7x-safe: 64 MiB/TC ceiling), rounded
    # to the sublane packing of the streamed dtypes (bf16 packs 16 rows/vreg).
    align = max(_row_align(yp.dtype), _row_align(yt.dtype))
    eff_max = max_tile_rows // 2 if with_complement else max_tile_rows
    eff_max = max(eff_max, align)
    if r <= eff_max:
        tr, nc = r, 1  # full-dim block: exempt from the alignment rule
    else:
        tr = (eff_max // align) * align
        nc = pl.cdiv(r, tr)

    needs_mask = (nc * tr != r) or (n_lane != n)
    acc_rows = SUBLANE if tr % SUBLANE == 0 else 1

    if with_complement:
        in_specs = [
            pl.BlockSpec((1, 1, tr, LANE), lambda bi, ci: (bi, 0, ci, 0)),
            pl.BlockSpec((1, 1, tr, LANE), lambda bi, ci: (bi, 1, ci, 0)),
            pl.BlockSpec((1, tr, LANE), lambda bi, ci: (bi, ci, 0)),
        ]
        args = (yp, yp, yt)
    else:
        in_specs = [
            pl.BlockSpec((1, tr, LANE), lambda bi, ci: (bi, ci, 0)),
            pl.BlockSpec((1, tr, LANE), lambda bi, ci: (bi, ci, 0)),
        ]
        args = (yp, yt)

    out = pl.pallas_call(
        functools.partial(
            _dice_kernel,
            is_soft=is_soft,
            with_complement=with_complement,
            tr=tr,
            n_valid=n,
            needs_mask=needs_mask,
        ),
        out_shape=jax.ShapeDtypeStruct((b, SUBLANE, LANE), jnp.float32),
        grid_spec=pltpu.PrefetchScalarGridSpec(
            num_scalar_prefetch=0,
            grid=(b, nc),
            in_specs=in_specs,
            out_specs=pl.BlockSpec((1, SUBLANE, LANE), lambda bi, ci: (bi, 0, 0)),
            scratch_shapes=[
                pltpu.VMEM((acc_rows, LANE), jnp.float32),  # numerator acc
                pltpu.VMEM((acc_rows, LANE), jnp.float32),  # merged denominator acc
            ],
        ),
        compiler_params=pltpu.CompilerParams(
            dimension_semantics=("parallel", "arbitrary"),
            vmem_limit_bytes=32 * 1024 * 1024,
        ),
    )(*args)

    # Per-batch losses were broadcast across the (8,128) output slab; take lane 0.
    return jnp.mean(out[:, 0, 0])


def _dice_loss_ref(y_pred, y_true, is_soft=False):
    if y_pred.shape[1] != y_true.shape[1]:
        y_true = jnp.concatenate(
            (y_true.astype(jnp.float32), 1.0 - y_true.astype(jnp.float32)), axis=1
        )
    b = y_pred.shape[0]
    yp = y_pred.reshape(b, -1).astype(jnp.float32)
    yt = y_true.reshape(b, -1).astype(jnp.float32)
    num = 2.0 * jnp.sum(yt * yp, axis=1) + EPS
    if is_soft:
        den = jnp.sum(yt ** 2, axis=1) + jnp.sum(yp ** 2, axis=1) + EPS
    else:
        den = jnp.sum(yt, axis=1) + jnp.sum(yp, axis=1) + EPS
    return jnp.mean(1.0 - num / den)


if __name__ == "__main__":
    key = jax.random.PRNGKey(0)
    ks = jax.random.split(key, 8)

    cases = []

    # 1) Matched channels, f32, 128-aligned N (common path).
    B, C, H, W = 2, 4, 16, 16
    yp_a = jax.nn.softmax(jax.random.normal(ks[0], (B, C, H, W), jnp.float32), axis=1)
    yt_a = (jax.random.uniform(ks[1], (B, C, H, W)) > 0.5).astype(jnp.float32)
    cases.append(("f32_aligned", yp_a, yt_a, {}))

    # 2) Native bf16 streaming (no wrapper-side upcast; in-kernel f32 cast).
    cases.append(("bf16_aligned", yp_a.astype(jnp.bfloat16), yt_a.astype(jnp.bfloat16), {}))

    # 3) Channel-mismatch path: complement (1 - y_true) handled in-kernel.
    yp_c = jax.nn.softmax(jax.random.normal(ks[2], (2, 4, 16, 16), jnp.float32), axis=1)
    yt_c = (jax.random.uniform(ks[3], (2, 2, 16, 16)) > 0.5).astype(jnp.float32)
    cases.append(("complement", yp_c, yt_c, {}))

    # 4) Multi-chunk with ragged trailing row block (forced small tiles).
    yp_m = jax.random.uniform(ks[4], (2, 5, 16, 16), jnp.float32)
    yt_m = (jax.random.uniform(ks[5], (2, 5, 16, 16)) > 0.5).astype(jnp.float32)
    cases.append(("multichunk_ragged", yp_m, yt_m, {"max_tile_rows": 8}))

    # 5) Non-128-aligned N (lane remainder masked in-kernel).
    yp_l = jax.random.uniform(ks[6], (2, 1, 25, 40), jnp.float32)
    yt_l = (jax.random.uniform(ks[7], (2, 1, 25, 40)) > 0.5).astype(jnp.float32)
    cases.append(("lane_remainder", yp_l, yt_l, {}))

    ok = True
    for name, p, t, kw in cases:
        for is_soft in (False, True):
            out = jax.block_until_ready(dice_loss(p, t, is_soft=is_soft, **kw))
            ref = _dice_loss_ref(p, t, is_soft=is_soft)
            if not jnp.allclose(out, ref, atol=1e-5, rtol=1e-4):
                ok = False
                print(f"MISMATCH {name} is_soft={is_soft}: kernel={out}, ref={ref}")

    if ok:
        print("KERNEL_OK")
</pallas_src>

<mosaic_0001>
module attributes {stable_mosaic.version = 11 : i64} {
  func.func @_dice_kernel(%arg0: i32, %arg1: i32, %arg2: memref<1x8x128xf32, #tpu.memory_space<vmem>>, %arg3: memref<1x8x128xf32, #tpu.memory_space<vmem>>, %arg4: memref<1x8x128xf32, #tpu.memory_space<vmem>>, %arg5: memref<8x128xf32, #tpu.memory_space<vmem>>, %arg6: memref<8x128xf32, #tpu.memory_space<vmem>>) attributes {dimension_semantics = [#tpu.dimension_semantics<parallel>, #tpu.dimension_semantics<arbitrary>], iteration_bounds = array<i64: 2, 1>, scalar_prefetch = 0 : i64, scratch_operands = 2 : i64, tpu.core_type = #tpu.core_type<tc>, window_params = [{transform_indices = @transform_0, window_bounds = array<i64: 1, 8, 128>}, {transform_indices = @transform_1, window_bounds = array<i64: 1, 8, 128>}, {transform_indices = @transform_2, window_bounds = array<i64: 1, 8, 128>}]} {
    %c0_i32 = arith.constant 0 : i32
    %0 = arith.cmpi eq, %arg1, %c0_i32 : i32
    %1 = arith.extui %0 : i1 to i32
    %c0_i32_0 = arith.constant 0 : i32
    %2 = arith.cmpi ne, %1, %c0_i32_0 : i32
    scf.if %2 {
      %cst_17 = arith.constant 0.000000e+00 : f32
      %22 = vector.broadcast %cst_17 : f32 to vector<8x128xf32>
      %c0_18 = arith.constant 0 : index
      %c0_19 = arith.constant 0 : index
      %23 = vector.load %arg5[%c0_18, %c0_19] : memref<8x128xf32, #tpu.memory_space<vmem>>, vector<8x128xf32>
      tpu.vector_store %arg5[%c0_18, %c0_19], %22 {strides = array<i32>} : memref<8x128xf32, #tpu.memory_space<vmem>>, vector<8x128xf32>,
      %cst_20 = arith.constant 0.000000e+00 : f32
      %24 = vector.broadcast %cst_20 : f32 to vector<8x128xf32>
      %c0_21 = arith.constant 0 : index
      %c0_22 = arith.constant 0 : index
      %25 = vector.load %arg6[%c0_21, %c0_22] : memref<8x128xf32, #tpu.memory_space<vmem>>, vector<8x128xf32>
      tpu.vector_store %arg6[%c0_21, %c0_22], %24 {strides = array<i32>} : memref<8x128xf32, #tpu.memory_space<vmem>>, vector<8x128xf32>,
    } else {
    }
    %c0 = arith.constant 0 : index
    %c0_1 = arith.constant 0 : index
    %c0_2 = arith.constant 0 : index
    %3 = vector.load %arg2[%c0, %c0_1, %c0_2] : memref<1x8x128xf32, #tpu.memory_space<vmem>>, vector<1x8x128xf32>
    %4 = vector.shape_cast %3 : vector<1x8x128xf32> to vector<8x128xf32>
    %c0_3 = arith.constant 0 : index
    %c0_4 = arith.constant 0 : index
    %c0_5 = arith.constant 0 : index
    %5 = vector.load %arg3[%c0_3, %c0_4, %c0_5] : memref<1x8x128xf32, #tpu.memory_space<vmem>>, vector<1x8x128xf32>
    %6 = vector.shape_cast %5 : vector<1x8x128xf32> to vector<8x128xf32>
    %7 = arith.mulf %6, %4 : vector<8x128xf32>
    %8 = arith.addf %6, %4 : vector<8x128xf32>
    %c0_6 = arith.constant 0 : index
    %c0_7 = arith.constant 0 : index
    %9 = vector.load %arg5[%c0_6, %c0_7] : memref<8x128xf32, #tpu.memory_space<vmem>>, vector<8x128xf32>
    %10 = vector.shape_cast %7 : vector<8x128xf32> to vector<1x8x128xf32>
    %cst = arith.constant dense<0.000000e+00> : vector<8x128xf32>
    %11 = vector.multi_reduction <add>, %10, %cst [0] : vector<1x8x128xf32> to vector<8x128xf32>
    %12 = arith.addf %9, %11 : vector<8x128xf32>
    %c0_8 = arith.constant 0 : index
    %c0_9 = arith.constant 0 : index
    %13 = vector.load %arg5[%c0_8, %c0_9] : memref<8x128xf32, #tpu.memory_space<vmem>>, vector<8x128xf32>
    tpu.vector_store %arg5[%c0_8, %c0_9], %12 {strides = array<i32>} : memref<8x128xf32, #tpu.memory_space<vmem>>, vector<8x128xf32>,
    %c0_10 = arith.constant 0 : index
    %c0_11 = arith.constant 0 : index
    %14 = vector.load %arg6[%c0_10, %c0_11] : memref<8x128xf32, #tpu.memory_space<vmem>>, vector<8x128xf32>
    %15 = vector.shape_cast %8 : vector<8x128xf32> to vector<1x8x128xf32>
    %cst_12 = arith.constant dense<0.000000e+00> : vector<8x128xf32>
    %16 = vector.multi_reduction <add>, %15, %cst_12 [0] : vector<1x8x128xf32> to vector<8x128xf32>
    %17 = arith.addf %14, %16 : vector<8x128xf32>
    %c0_13 = arith.constant 0 : index
    %c0_14 = arith.constant 0 : index
    %18 = vector.load %arg6[%c0_13, %c0_14] : memref<8x128xf32, #tpu.memory_space<vmem>>, vector<8x128xf32>
    tpu.vector_store %arg6[%c0_13, %c0_14], %17 {strides = array<i32>} : memref<8x128xf32, #tpu.memory_space<vmem>>, vector<8x128xf32>,
    %c0_i32_15 = arith.constant 0 : i32
    %19 = arith.cmpi eq, %arg1, %c0_i32_15 : i32
    %20 = arith.extui %19 : i1 to i32
    %c0_i32_16 = arith.constant 0 : i32
    %21 = arith.cmpi ne, %20, %c0_i32_16 : i32
    scf.if %21 {
      %c0_17 = arith.constant 0 : index
      %c0_18 = arith.constant 0 : index
      %22 = vector.load %arg5[%c0_17, %c0_18] : memref<8x128xf32, #tpu.memory_space<vmem>>, vector<8x128xf32>
      %23 = vector.shape_cast %22 : vector<8x128xf32> to vector<1x8x128xf32>
      %cst_19 = arith.constant dense<0.000000e+00> : vector<1xf32>
      %24 = vector.multi_reduction <add>, %23, %cst_19 [1, 2] : vector<1x8x128xf32> to vector<1xf32>
      %25 = vector.shape_cast %24 : vector<1xf32> to vector<1x1x1xf32>
      %26 = vector.extract %25[0, 0, 0] : f32 from vector<1x1x1xf32>
      %c0_20 = arith.constant 0 : index
      %c0_21 = arith.constant 0 : index
      %27 = vector.load %arg6[%c0_20, %c0_21] : memref<8x128xf32, #tpu.memory_space<vmem>>, vector<8x128xf32>
      %28 = vector.shape_cast %27 : vector<8x128xf32> to vector<1x8x128xf32>
      %cst_22 = arith.constant dense<0.000000e+00> : vector<1xf32>
      %29 = vector.multi_reduction <add>, %28, %cst_22 [1, 2] : vector<1x8x128xf32> to vector<1xf32>
      %30 = vector.shape_cast %29 : vector<1xf32> to vector<1x1x1xf32>
      %31 = vector.extract %30[0, 0, 0] : f32 from vector<1x1x1xf32>
      %cst_23 = arith.constant 2.000000e+00 : f32
      %32 = arith.mulf %cst_23, %26 : f32
      %cst_24 = arith.constant 9.99999974E-6 : f32
      %33 = arith.addf %32, %cst_24 : f32
      %cst_25 = arith.constant 9.99999974E-6 : f32
      %34 = arith.addf %31, %cst_25 : f32
      %35 = arith.divf %33, %34 : f32
      %cst_26 = arith.constant 1.000000e+00 : f32
      %36 = arith.subf %cst_26, %35 : f32
      %37 = vector.broadcast %36 : f32 to vector<1x8x128xf32>
      %c0_27 = arith.constant 0 : index
      %c0_28 = arith.constant 0 : index
      %c0_29 = arith.constant 0 : index
      %38 = vector.load %arg4[%c0_27, %c0_28, %c0_29] : memref<1x8x128xf32, #tpu.memory_space<vmem>>, vector<1x8x128xf32>
      tpu.vector_store %arg4[%c0_27, %c0_28, %c0_29], %37 {strides = array<i32>} : memref<1x8x128xf32, #tpu.memory_space<vmem>>, vector<1x8x128xf32>,
    } else {
    }
    return
  }
  func.func @transform_0(%arg0: i32, %arg1: i32) -> (i32, i32, i32) {
    %c0_i32 = arith.constant 0 : i32
    %c0_i32_0 = arith.constant 0 : i32
    return %arg0, %arg1, %c0_i32 : i32, i32, i32
  }
  func.func @transform_1(%arg0: i32, %arg1: i32) -> (i32, i32, i32) {
    %c0_i32 = arith.constant 0 : i32
    %c0_i32_0 = arith.constant 0 : i32
    return %arg0, %arg1, %c0_i32 : i32, i32, i32
  }
  func.func @transform_2(%arg0: i32, %arg1: i32) -> (i32, i32, i32) {
    %c0_i32 = arith.constant 0 : i32
    %c0_i32_0 = arith.constant 0 : i32
    %c0_i32_1 = arith.constant 0 : i32
    return %arg0, %c0_i32, %c0_i32_0 : i32, i32, i32
  }
}

</mosaic_0001>

<bundles_post_ra>
// kernel: tpu_custom_call.1
= control target key start
LH: loop header
LB: loop body
LE: loop exit
PB: predicated region body
PF: predicated region fallthrough
CT: control target
= control target key end

     0   :  { %7 = vsyncpa [#allocation5], 0  ;;  %s805_s0 = inlined_call_operand.hbm [shape: f32[2,8,128], index: 0, kind: input, shape index: {}]   ;;  %s806_s1 = inlined_call_operand.hbm [shape: f32[2,8,128], index: 1, kind: input, shape index: {}]   ;;  %s807_s2 = inlined_call_operand.hbm [shape: f32[2,8,128], index: 2, kind: output, shape index: {}]  }
   0x1   :  { %9 = vsyncpa [#allocation5 + $0x1], 0 }
   0x2   :  { %10 = vsyncpa [#allocation8], 0 }
   0x3   :  { %12 = vsyncpa [#allocation8 + $0x1], 0 }
   0x4   :  { %13 = vsyncpa [#allocation6], 0 }
   0x5   :  { %15 = vsyncpa [#allocation6 + $0x1], 0  ;;  %s633_s9 = smov 0   ;;  %s635_s10 = smov 0  }
   0x6   :  { %s637_s11 = smov 0   ;;  %s639_s12 = smov 0  }
   0x7   :  { %s641_s13 = smov 0   ;;  %s643_s14 = smov 0  }
   0x8 LB: > { %s382_s15 = sadd.s32 4294967295, %s613_s14   ;;  %s383_s16 = sadd.s32 4294967294, %s613_s14   ;;  %s613_s14 = sphi %s643_s14, %s21_s14   ;;  %s609_s13 = sphi %s641_s13, %s819_s13   ;;  %s605_s12 = sphi %s639_s12, %s818_s12   ;;  %s601_s11 = sphi %s637_s11, %s817_s11   ;;  %s597_s10 = sphi %s635_s10, %s816_s10   ;;  %s593_s9 = sphi %s633_s9, %s815_s9  }
   0x9   : > { %s33_s17 = sadd.s32 1, %s609_s13  ;;  %s42_s18 = sadd.s32 1, %s601_s11 }
   0xa   : > { %p35_p0 = scmp.ge.s32.totalorder %s33_s17, 2  ;;  %p49_p1 = scmp.ne.s32.totalorder %s601_s11, %s597_s10 }
   0xb   : > { %p50_p2 = scmp.eq.s32.totalorder %s613_s14, 0  ;;  %p55_p3 = scmp.ne.s32.totalorder %s597_s10, %s593_s9 }
   0xc   : > { %s821_s17 = smov (%p35_p0, %s33_s17), 0  ;;  %p56_p5 = scmp.eq.s32.totalorder %s382_s15, 0 }
   0xd   : > { %p674_p4 = por %p50_p2, %p49_p1  ;;  %s37_s20 = ssub.s32 %s609_s13, %s821_s17 }
   0xe   : > { %p107_p6 = scmp.eq.s32.totalorder %s382_s15, 1  ;;  %p40_p7 = scmp.eq.s32.totalorder %s37_s20, 0 }
   0xf   : > { %p680_p8 = por %p56_p5, %p55_p3  ;;  %p113_p10 = scmp.eq.s32.totalorder %s383_s16, 1 }
  0x10   : > { %p684_p9 = por %p107_p6, %p49_p1  ;;  %p421_p13 = scmp.lt.s32.totalorder %s613_s14, 2 }
  0x11   : > { %s689_s23 = scalar_select %p40_p7, %s601_s11, %s42_s18  }
  0x12   : > { %p691_p11 = por %p113_p10, %p55_p3  ;;  %s698_s25 = sand.u32 1, %s601_s11  }
  0x13   : > { %s386_s26 = sshll.u32 %s698_s25, 3  ;;  %s387_s27 = sshll.u32 %s609_s13, 7 }
  0x14   : > { %s143_s30 = scalar_lea.hbm %s805_s0, %s387_s27  ;;  %s137_s3 = scalar_lea.vmem [#allocation4], %s386_s26 }
  0x15   : > { %s145_s4 = sshll.u32 %s137_s3, 4  ;;  %p707_p0 = pnand %p421_p13, %p674_p4  ;;  %s146_s4 = int_to_ptr.vmem [resolvable:$true] %s145_s4 }
  0x16   : > { %p390_p1 = scmp.ge.s32.totalorder %s613_s14, 1  ;;  %p169_p2 = scmp.lt.s32.totalorder %s613_s14, 3 }
  0x17   : > { %s134_s6 = scalar_lea.sflag [#allocation5], %s698_s25  ;;  %p475_p3 = pneg %p707_p0 }
  0x18   : > { %s486_s7 = scalar_lea.vmem %s146_s4, 128  ;;  %s615_s8 = smov [#allocation4]  }
  0x19   : > { %p487_p5 = scmp.ne.s32.totalorder %s146_s4, %s486_s7  ;;  %s491_s15 = sshll.u32 %s615_s8, 4  ;;  %s492_s15 = int_to_ptr.vmem [resolvable:$false] %s491_s15 }
  0x1a   : > { %s493_s16 = scalar_lea.vmem %s492_s15, 256  ;;  %p494_p4 = scmp.lt.s32.totalorder %s146_s4, %s492_s15 }
  0x1b   : > { %p489_p6 = pnand %p487_p5, %p475_p3  ;;  %p495_p10 = scmp.lt.s32.totalorder %s493_s16, %s486_s7 }
  0x1d   : > { %p490_p7 = pneg %p489_p6  ;;  %p496_p13 = por %p495_p10, %p494_p4 }
  0x1f   : > { %p497_p12 = pnand %p496_p13, %p490_p7 }
  0x21   : > { %500 = shalt.err (!%p497_p12)
}
  0x22   : > { %413 = dma.hbm_to_vmem [thread:$0]  (!%p707_p0), %s143_s30, 128, %s146_s4, %s134_s6  }
  0x23   : > { %p725_p5 = pnand %p390_p1, %p169_p2  ;;  %s162_s28 = scalar_lea.hbm %s806_s1, %s387_s27 }
  0x24   : > { %s156_s29 = scalar_lea.vmem [#allocation7], %s386_s26  ;;  %s153_s7 = scalar_lea.sflag [#allocation8], %s698_s25 }
  0x25   : > { %s164_s3 = sshll.u32 %s156_s29, 4  ;;  %s616_s30 = smov [#allocation7]   ;;  %s165_s3 = int_to_ptr.vmem [resolvable:$true] %s164_s3 }
  0x26   : > { %s514_s8 = scalar_lea.vmem %s165_s3, 128  ;;  %s519_s4 = sshll.u32 %s616_s30, 4  ;;  %s520_s4 = int_to_ptr.vmem [resolvable:$false] %s519_s4 }
  0x27   : > { %p515_p12 = scmp.ne.s32.totalorder %s165_s3, %s514_s8  ;;  %s521_s6 = scalar_lea.vmem %s520_s4, 256 }
  0x28   : > { %p522_p1 = scmp.lt.s32.totalorder %s165_s3, %s520_s4  ;;  %p523_p2 = scmp.lt.s32.totalorder %s521_s6, %s514_s8 }
  0x29   : > { %p517_p6 = pnand %p515_p12, %p475_p3 }
  0x2a   : > { %p524_p4 = por %p523_p2, %p522_p1 }
  0x2b   : > { %p518_p7 = pneg %p517_p6 }
  0x2d   : > { %p525_p10 = pnand %p524_p4, %p518_p7 }
  0x2f   : > { %528 = shalt.err (!%p525_p10)
}
  0x30   : > { %416 = dma.hbm_to_vmem [thread:$0]  (!%p707_p0), %s162_s28, 128, %s165_s3, %s153_s7  }
  0x31   : > { %173 = sbr.rel (%p725_p5) target bundleno = 349 (0x15d), region = 28  ;;  %s741_s25 = sand.u32 (!%p725_p5), 1, %s597_s10  }
  0x32   : > { %s744_s26 = sshll.u32 (!%p725_p5), %s741_s25, 3  ;;  %s176_s27 = scalar_lea.sflag (!%p725_p5), [#allocation5], %s741_s25 }
  0x33   : > { %s179_s15 = scalar_lea.vmem (!%p725_p5), [#allocation4], %s744_s26 }
  0x36   : > { %580 = dma.done.wait (%p680_p8), %s176_s27, 128  }
  0x37   : > { %582 = vsyncadd (%p680_p8), %s176_s27, 4294967168  ;;  %s185_s5 = scalar_lea.sflag [#allocation8], %s741_s25  ;;  %s188_s16 = scalar_lea.vmem [#allocation7], %s744_s26 }
  0x38   : > { %584 = dma.done.wait (%p680_p8), %s185_s5, 128  }
  0x39   : > { %586 = vsyncadd (%p680_p8), %s185_s5, 4294967168  ;;  %v220_v0 = vld [vmem:[%s179_s15] sm:$0xff]  ;;  %v221_v1 = vld [vmem:[%s188_s16] sm:$0xff]  ;;  %s395_s3 = sshll.u32 %s605_s12, 7  ;;  %s213_s8 = scalar_lea.vmem [#allocation9], %s744_s26 }
  0x3a   : > { %v222_v2 = vmul.f32 %v221_v1, %v220_v0  ;;  %v223_v3 = vadd.f32 %v221_v1, %v220_v0  ;;  %s279_s30 = sshll.u32 %s213_s8, 4  ;;  %s763_s15 = scalar_lea.hbm %s807_s2, %s395_s3  ;;  %s280_s30 = int_to_ptr.vmem [resolvable:$true] %s279_s30 }
  0x3b   : > { %s266_s5 = scalar_lea.sflag [#allocation6], %s741_s25  ;;  %s529_s16 = scalar_lea.vmem %s280_s30, 128 }
  0x3c   : > { %236 = vadd.xlane.f32.xlu0 %v222_v2  ;;  %p530_p8 = scmp.ne.s32.totalorder %s280_s30, %s529_s16 }
  0x3e   : > { %p531_p0 = pnand %p530_p8, %p684_p9 }
  0x40   : > { %246 = vadd.xlane.f32.xlu0 %v223_v3  ;;  %p532_p3 = pneg %p531_p0 }
  0xc5   : > { %v237_v4 = vpop.xlane.xlu0 %236 }
  0xc6   : > { %v238_v5 = vrot.slane %v237_v4, 4 }
  0xc8   : > { %v239_v6 = vadd.f32 %v238_v5, %v237_v4 }
  0xc9   : > { %v247_v7 = vpop.xlane.xlu0 %246 }
  0xca   : > { %v240_v8 = vrot.slane %v239_v6, 2  ;;  %v248_v9 = vrot.slane %v247_v7, 4 }
  0xcc   : > { %v249_v10 = vadd.f32 %v248_v9, %v247_v7  ;;  %v241_v11 = vadd.f32 %v240_v8, %v239_v6 }
  0xce   : > { %v250_v12 = vrot.slane %v249_v10, 2  ;;  %v242_v13 = vrot.slane %v241_v11, 1 }
  0xd0   : > { %v251_v14 = vadd.f32 %v250_v12, %v249_v10  ;;  %v243_v15 = vadd.f32 %v242_v13, %v241_v11 }
  0xd2   : > { %398 = vpush %v243_v15  ;;  %v252_v16 = vrot.slane %v251_v14, 1 }
  0xd4   : > { %v253_v17 = vadd.f32 %v252_v16, %v251_v14 }
  0xd6   : > { %400 = vpush %v253_v17 }
 0x103   : > { %s399_s21 = spop %398 }
 0x104   : > { %s255_s20 = smul.f32 2.0, %s399_s21  ;;  %s617_s21 = smov [#allocation9]  }
 0x105   : > { %s533_s12 = sshll.u32 %s617_s21, 4  ;;  %s534_s12 = int_to_ptr.vmem [resolvable:$false] %s533_s12 }
 0x106   : > { %s256_s28 = sadd.f32 1e-05, %s255_s20  ;;  %s535_s26 = scalar_lea.vmem %s534_s12, 256 }
 0x107   : > { %s401_s18 = spop %400  ;;  %p536_p13 = scmp.lt.s32.totalorder %s280_s30, %s534_s12 }
 0x108   : > { %s257_s19 = sadd.f32 1e-05, %s401_s18  ;;  %p537_p5 = scmp.lt.s32.totalorder %s535_s26, %s529_s16 }
 0x10a   : > { %v258_v18 = vstv %s257_s19  ;;  %p538_p12 = por %p537_p5, %p536_p13 }
 0x10b   : > { %471 = vrcp.f32 %v258_v18 }
 0x10c   : > { %p539_p6 = pnand %p538_p12, %p532_p3 }
 0x118   : > { %v472_v19 = vpop.eup %471 }
 0x119   : > { %402 = vpush %v472_v19 }
 0x14a   : > { %s403_s29 = spop %402 }
 0x14b   : > { %s261_s7 = smul.f32 %s403_s29, %s256_s28 }
 0x14d   : > { %s262_s4 = ssub.f32 1.0, %s261_s7 }
 0x14f   : > { %v263_v20 = vstv %s262_s4 }
 0x150   : > { %264 = vst [vmem:[%s213_s8] sm:$0xff] %v263_v20 }
 0x151   : > { %542 = shalt.err (!%p539_p6)
}
 0x152   : > { %s543_s18 = scalar_lea.hbm %s763_s15, 128  ;;  %s547_s20 = scalar_lea.hbm %s807_s2, 256 }
 0x153   : > { %p544_p7 = scmp.ne.s32.totalorder %s763_s15, %s543_s18  ;;  %p548_p4 = scmp.lt.s32.totalorder %s763_s15, %s807_s2 }
 0x154   : > { %p549_p10 = scmp.lt.s32.totalorder %s547_s20, %s543_s18 }
 0x155   : > { %p545_p1 = pnand %p544_p7, %p684_p9 }
 0x156   : > { %p550_p8 = por %p549_p10, %p548_p4 }
 0x157   : > { %p546_p2 = pneg %p545_p1 }
 0x159   : > { %p551_p0 = pnand %p550_p8, %p546_p2 }
 0x15b   : > { %554 = shalt.err (!%p551_p0)
}
 0x15c   : > { %408 = dma.vmem_to_hbm [thread:$0]  (%p684_p9), %s280_s30, 128, %s763_s15, %s266_s5  }
 0x15d PF: > { %s291_s3 = sand.u32 1, %s593_s9   ;;  %p814_p3 = scmp.ge.s32.totalorder %s613_s14, 2 }
 0x15e   : > { %s292_s7 = scalar_lea.sflag [#allocation6], %s291_s3 }
 0x15f   : > { %p418_p13 = pnand %p814_p3, %p691_p11 }
 0x161   : > { %p419_p5 = pneg %p418_p13 }
 0x163   : > { %588 = dma.done.wait (%p419_p5), %s292_s7, 128  }
 0x164   : > { %590 = vsyncadd (%p419_p5), %s292_s7, 4294967168  ;;  %s21_s14 = sadd.s32 1, %s613_s14   ;;  %s815_s9 = smov %s597_s10 }
 0x165   : > { %p18_p12 = scmp.ge.s32.totalorder %s21_s14, 4   ;;  %s816_s10 = smov %s601_s11 }
 0x166   : > { %s817_s11 = smov %s689_s23  ;;  %s818_s12 = smov %s609_s13 }
 0x167   : > { %s819_s13 = smov %s821_s17  ;;  %20 = sbr.rel (!%p18_p12) target bundleno = 8 (0x8), region = 94 }
 0x16c   :  { %297 = vsyncpa [#allocation5], 1 }
 0x16d   :  { %299 = vsyncpa [#allocation5 + $0x1], 1 }
 0x16e   :  { %300 = vsyncpa [#allocation8], 1 }
 0x16f   :  { %302 = vsyncpa [#allocation8 + $0x1], 1 }
 0x170   :  { %303 = vsyncpa [#allocation6], 1 }
 0x171   :  { %305 = vsyncpa [#allocation6 + $0x1], 1 }

</bundles_post_ra>
